<compile_context>
chip_gen: v5e
topology: v5e:2x2
jax: 0.10.0
libtpu: 0.0.40
codegen_flags: <defaults>
</compile_context>

<pallas_src>
import functools

import jax
import jax.numpy as jnp
from jax.experimental import pallas as pl
from jax.experimental.pallas import tpu as pltpu


def _round_up(x, m):
    return ((x + m - 1) // m) * m


def _pad_to(a, shape):
    pads = [(0, s - d) for d, s in zip(a.shape, shape)]
    if all(p == (0, 0) for p in pads):
        return a
    return jnp.pad(a, pads)


def _dot(a, b):
    # f32 x f32 -> full-precision MXU passes; bf16 uses the native MXU path.
    prec = (jax.lax.Precision.HIGHEST
            if a.dtype == jnp.float32 and b.dtype == jnp.float32 else None)
    return jnp.dot(a, b, preferred_element_type=jnp.float32, precision=prec)


def _mlp_kernel(x_ref, w1_ref, b1_ref, w2_ref, b2_ref, w3_ref, b3_ref, o_ref,
                *, n_sub):
    """Three MXU matmuls with f32 accumulation; bias-add / ReLU in f32 on the VPU.

    The batch tile is split into `n_sub` independent sub-tile chains so the scheduler
    can overlap one sub-tile's VPU epilogue with another sub-tile's matmuls.
    """
    bt = x_ref.shape[0]
    sub = bt // n_sub
    for j in range(n_sub):                                   # static unroll
        rows = pl.ds(j * sub, sub)
        x = x_ref[rows, :].astype(w1_ref.dtype)              # in-kernel cast (VPU)
        h1 = _dot(x, w1_ref[...]) + b1_ref[...]
        h1 = jnp.maximum(h1, 0.0).astype(w2_ref.dtype)
        h2 = _dot(h1, w2_ref[...]) + b2_ref[...]
        h2 = jnp.maximum(h2, 0.0).astype(w3_ref.dtype)
        y = _dot(h2, w3_ref[...]) + b3_ref[...]
        o_ref[rows, :] = y.astype(o_ref.dtype)


def prepare_params(params, compute_dtype=jnp.bfloat16):
    """Pad weights/biases to lane-dense multiples of 128 and cast ONCE (reuse across calls)."""
    in_dim, hid = params["w1"].shape
    out_dim = params["w3"].shape[1]
    hid_p = _round_up(hid, 128)
    out_p = _round_up(out_dim, 128)
    return {
        "w1": _pad_to(params["w1"], (in_dim, hid_p)).astype(compute_dtype),
        "b1": _pad_to(params["b1"].reshape(1, -1), (1, hid_p)).astype(jnp.float32),
        "w2": _pad_to(params["w2"], (hid_p, out_p)).astype(compute_dtype),
        "b2": _pad_to(params["b2"].reshape(1, -1), (1, out_p)).astype(jnp.float32),
        "w3": _pad_to(params["w3"], (out_p, out_p)).astype(compute_dtype),
        "b3": _pad_to(params["b3"].reshape(1, -1), (1, out_p)).astype(jnp.float32),
        "out_dim": int(out_dim),
    }


def _pallas_forward(x_p, w1, b1, w2, b2, w3, b3, *, bt, n_sub, grid, out_p,
                    out_dtype, vmem_limit, flops, bytes_accessed,
                    single_buffer_weights):
    B_pad, in_dim = x_p.shape
    hid_p = w1.shape[1]
    if single_buffer_weights:
        resident = lambda s: pl.BlockSpec(s, lambda i: (0, 0),
                                          pipeline_mode=pl.Buffered(1))
    else:
        resident = lambda s: pl.BlockSpec(s, lambda i: (0, 0))

    return pl.pallas_call(
        functools.partial(_mlp_kernel, n_sub=n_sub),
        out_shape=jax.ShapeDtypeStruct((B_pad, out_p), out_dtype),
        grid=grid,
        in_specs=[
            pl.BlockSpec((bt, in_dim), lambda i: (i, 0)),   # x tile (double-buffered)
            resident((in_dim, hid_p)),                      # w1 (resident)
            resident((1, hid_p)),                           # b1
            resident((hid_p, out_p)),                       # w2
            resident((1, out_p)),                           # b2
            resident((out_p, out_p)),                       # w3
            resident((1, out_p)),                           # b3
        ],
        out_specs=pl.BlockSpec((bt, out_p), lambda i: (i, 0)),
        compiler_params=pltpu.CompilerParams(
            dimension_semantics=("parallel",),
            vmem_limit_bytes=vmem_limit,
        ),
        cost_estimate=pl.CostEstimate(
            flops=flops, transcendentals=0, bytes_accessed=bytes_accessed),
    )(x_p, w1, b1, w2, b2, w3, b3)


def strong_proj_head(x, prepped, *, batch_tile=512, out_dtype=None):
    """x: (B, in_dim), any float dtype. prepped: output of prepare_params()."""
    B, in_dim = x.shape
    w1, b1 = prepped["w1"], prepped["b1"]
    w2, b2 = prepped["w2"], prepped["b2"]
    w3, b3 = prepped["w3"], prepped["b3"]
    out_dim = prepped["out_dim"]
    assert w1.shape[0] == in_dim, "x feature dim does not match w1 fan-in"
    hid_p, out_p = w1.shape[1], w3.shape[1]
    out_dtype = x.dtype if out_dtype is None else out_dtype

    cbytes = jnp.dtype(w1.dtype).itemsize
    xbytes = jnp.dtype(x.dtype).itemsize
    obytes = jnp.dtype(out_dtype).itemsize

    # ---- batch tile: MXU-friendly multiple of 128; >=2 grid steps for big batches ----
    bt = max(128, _round_up(batch_tile, 128))
    b_ceil = _round_up(B, 128)
    bt = min(bt, b_ceil)
    if b_ceil >= 512 and bt > _round_up(b_ceil // 2, 256):
        bt = _round_up(b_ceil // 2, 256)        # v7x: keep both TensorCores busy

    # ---- generation-aware VMEM budget & explicit fit check ----
    try:
        vmem_phys = int(pltpu.get_tpu_info().vmem_capacity_bytes)
    except Exception:
        vmem_phys = 64 << 20                    # conservative (v7x-sized) fallback
    hard_cap = max(32 << 20, vmem_phys - (16 << 20))

    weights_b = ((in_dim * hid_p + hid_p * out_p + out_p * out_p) * cbytes
                 + (hid_p + 2 * out_p) * 4)     # weights single-buffered + f32 biases

    def vmem_needed(bt_):
        n_sub_ = 2 if bt_ >= 256 else 1
        x_tile = bt_ * in_dim * xbytes
        out_tile = bt_ * out_p * obytes
        interm = (bt_ // n_sub_) * (hid_p + out_p) * (4 + cbytes)
        return weights_b + 2 * (x_tile + out_tile) + interm

    needed = vmem_needed(bt)
    while needed > hard_cap and bt > 128:
        bt = max(128, ((bt // 2) // 128) * 128)
        needed = vmem_needed(bt)
    if needed > hard_cap:
        # TODO(synk): for heads whose resident weights exceed VMEM, add a K-tiled grid
        # axis with a VMEM accumulator instead of keeping full weights resident.
        raise ValueError(
            f"StrongProjHead weights ({weights_b / 2**20:.1f} MiB) exceed the VMEM "
            f"budget ({hard_cap / 2**20:.1f} MiB); K-tiling not implemented.")
    # Generous compiler budget (covers the double-buffered fallback path too).
    vmem_limit = int(min(hard_cap, max(2 * needed + (4 << 20), 32 << 20)))

    n_sub = 2 if bt >= 256 else 1
    B_pad = _round_up(B, bt)
    grid = (B_pad // bt,)

    # Batch-pad only; no dtype cast pass over x (the kernel casts on the fly).
    x_p = _pad_to(x, (B_pad, in_dim))

    flops = 2 * B_pad * (in_dim * hid_p + hid_p * out_p + out_p * out_p)
    bytes_accessed = (B_pad * in_dim * xbytes + weights_b + B_pad * out_p * obytes)

    kwargs = dict(bt=bt, n_sub=n_sub, grid=grid, out_p=out_p, out_dtype=out_dtype,
                  vmem_limit=vmem_limit, flops=flops, bytes_accessed=bytes_accessed)
    try:
        y_pad = _pallas_forward(x_p, w1, b1, w2, b2, w3, b3,
                                single_buffer_weights=True, **kwargs)
    except Exception:
        # Fallback if this Pallas build rejects single-buffered (Buffered(1)) blocks.
        y_pad = _pallas_forward(x_p, w1, b1, w2, b2, w3, b3,
                                single_buffer_weights=False, **kwargs)

    # Strip batch padding and the lane padding of the output columns.
    return y_pad[:B, :out_dim]


def init_params(key, in_dim, out_dim, dtype=jnp.float32):
    """Deterministic init mirroring PyTorch nn.Linear (uniform +-1/sqrt(fan_in))."""
    hid = out_dim * 2
    ks = jax.random.split(key, 6)

    def lin(kw, kb, fan_in, fan_out):
        bound = 1.0 / jnp.sqrt(jnp.asarray(fan_in, dtype))
        w = jax.random.uniform(kw, (fan_in, fan_out), dtype, -bound, bound)
        b = jax.random.uniform(kb, (1, fan_out), dtype, -bound, bound)
        return w, b

    w1, b1 = lin(ks[0], ks[1], in_dim, hid)
    w2, b2 = lin(ks[2], ks[3], hid, out_dim)
    w3, b3 = lin(ks[4], ks[5], out_dim, out_dim)
    return {"w1": w1, "b1": b1, "w2": w2, "b2": b2, "w3": w3, "b3": b3}


def reference(x, p):
    h1 = jnp.maximum(x @ p["w1"] + p["b1"], 0.0)
    h2 = jnp.maximum(h1 @ p["w2"] + p["b2"], 0.0)
    return h2 @ p["w3"] + p["b3"]


if __name__ == "__main__":
    key = jax.random.PRNGKey(0)
    kx1, kx2, kp = jax.random.split(key, 3)

    in_dim, out_dim = 32, 16
    params = init_params(kp, in_dim, out_dim)
    prepped_bf16 = prepare_params(params, jnp.bfloat16)   # pad + cast ONCE, reuse

    # Small batch (grid=1, single sub-tile chain).
    B1 = 8
    x1 = jax.random.normal(kx1, (B1, in_dim), jnp.float32)
    y_ref1 = reference(x1, params)
    y1 = jax.block_until_ready(strong_proj_head(x1, prepped_bf16))
    assert y1.shape == (B1, out_dim)
    assert jnp.allclose(y1, y_ref1, atol=5e-2, rtol=5e-2)

    # Ragged batch (multi-step grid, 2 sub-tiles per step, batch-padding path).
    B2 = 300
    x2 = jax.random.normal(kx2, (B2, in_dim), jnp.float32)
    y_ref2 = reference(x2, params)
    y2 = jax.block_until_ready(strong_proj_head(x2, prepped_bf16, batch_tile=256))
    assert y2.shape == (B2, out_dim)
    assert jnp.allclose(y2, y_ref2, atol=5e-2, rtol=5e-2)

    # f32 compute path: verifies the padding / tiling machinery is (near-)exact.
    prepped_f32 = prepare_params(params, jnp.float32)
    y32 = jax.block_until_ready(strong_proj_head(x2, prepped_f32, batch_tile=256))
    assert y32.shape == (B2, out_dim)
    assert jnp.allclose(y32, y_ref2, atol=1e-4, rtol=1e-4)

    print("KERNEL_OK")
</pallas_src>

<mosaic_0001>
module attributes {stable_mosaic.version = 11 : i64} {
  func.func @_mlp_kernel(%arg0: i32, %arg1: memref<128x32xf32, #tpu.memory_space<vmem>>, %arg2: memref<32x128xbf16, #tpu.memory_space<vmem>>, %arg3: memref<1x128xf32, #tpu.memory_space<vmem>>, %arg4: memref<128x128xbf16, #tpu.memory_space<vmem>>, %arg5: memref<1x128xf32, #tpu.memory_space<vmem>>, %arg6: memref<128x128xbf16, #tpu.memory_space<vmem>>, %arg7: memref<1x128xf32, #tpu.memory_space<vmem>>, %arg8: memref<128x128xf32, #tpu.memory_space<vmem>>) attributes {dimension_semantics = [#tpu.dimension_semantics<parallel>], iteration_bounds = array<i64: 1>, scalar_prefetch = 0 : i64, scratch_operands = 0 : i64, tpu.core_type = #tpu.core_type<tc>, window_params = [{transform_indices = @transform_0, window_bounds = array<i64: 128, 32>}, {pipeline_mode = #tpu.pipeline_mode<synchronous>, transform_indices = @transform_1, window_bounds = array<i64: 32, 128>}, {pipeline_mode = #tpu.pipeline_mode<synchronous>, transform_indices = @transform_2, window_bounds = array<i64: 1, 128>}, {pipeline_mode = #tpu.pipeline_mode<synchronous>, transform_indices = @transform_3, window_bounds = array<i64: 128, 128>}, {pipeline_mode = #tpu.pipeline_mode<synchronous>, transform_indices = @transform_4, window_bounds = array<i64: 1, 128>}, {pipeline_mode = #tpu.pipeline_mode<synchronous>, transform_indices = @transform_5, window_bounds = array<i64: 128, 128>}, {pipeline_mode = #tpu.pipeline_mode<synchronous>, transform_indices = @transform_6, window_bounds = array<i64: 1, 128>}, {transform_indices = @transform_7, window_bounds = array<i64: 128, 128>}]} {
    %c0 = arith.constant 0 : index
    %c0_0 = arith.constant 0 : index
    %0 = vector.load %arg1[%c0, %c0_0] : memref<128x32xf32, #tpu.memory_space<vmem>>, vector<128x32xf32>
    %1 = arith.truncf %0 : vector<128x32xf32> to vector<128x32xbf16>
    %c0_1 = arith.constant 0 : index
    %c0_2 = arith.constant 0 : index
    %2 = vector.load %arg2[%c0_1, %c0_2] : memref<32x128xbf16, #tpu.memory_space<vmem>>, vector<32x128xbf16>
    %cst = arith.constant dense<0.000000e+00> : vector<128x128xf32>
    %3 = tpu.matmul %1, %2, %cst {dimension_numbers = #tpu.dot_dimension_numbers<[1], [0], [0], [1], [0, 0, 1, 1], [], []>} : vector<128x32xbf16>, vector<32x128xbf16>, vector<128x128xf32> -> vector<128x128xf32>
    %c0_3 = arith.constant 0 : index
    %c0_4 = arith.constant 0 : index
    %4 = vector.load %arg3[%c0_3, %c0_4] : memref<1x128xf32, #tpu.memory_space<vmem>>, vector<1x128xf32>
    %5 = vector.broadcast %4 : vector<1x128xf32> to vector<128x128xf32>
    %6 = arith.addf %3, %5 : vector<128x128xf32>
    %cst_5 = arith.constant 0.000000e+00 : f32
    %7 = vector.broadcast %cst_5 : f32 to vector<128x128xf32>
    %8 = arith.maximumf %6, %7 : vector<128x128xf32>
    %9 = arith.truncf %8 : vector<128x128xf32> to vector<128x128xbf16>
    %c0_6 = arith.constant 0 : index
    %c0_7 = arith.constant 0 : index
    %10 = vector.load %arg4[%c0_6, %c0_7] : memref<128x128xbf16, #tpu.memory_space<vmem>>, vector<128x128xbf16>
    %cst_8 = arith.constant dense<0.000000e+00> : vector<128x128xf32>
    %11 = tpu.matmul %9, %10, %cst_8 {dimension_numbers = #tpu.dot_dimension_numbers<[1], [0], [0], [1], [0, 0, 1, 1], [], []>} : vector<128x128xbf16>, vector<128x128xbf16>, vector<128x128xf32> -> vector<128x128xf32>
    %c0_9 = arith.constant 0 : index
    %c0_10 = arith.constant 0 : index
    %12 = vector.load %arg5[%c0_9, %c0_10] : memref<1x128xf32, #tpu.memory_space<vmem>>, vector<1x128xf32>
    %13 = vector.broadcast %12 : vector<1x128xf32> to vector<128x128xf32>
    %14 = arith.addf %11, %13 : vector<128x128xf32>
    %cst_11 = arith.constant 0.000000e+00 : f32
    %15 = vector.broadcast %cst_11 : f32 to vector<128x128xf32>
    %16 = arith.maximumf %14, %15 : vector<128x128xf32>
    %17 = arith.truncf %16 : vector<128x128xf32> to vector<128x128xbf16>
    %c0_12 = arith.constant 0 : index
    %c0_13 = arith.constant 0 : index
    %18 = vector.load %arg6[%c0_12, %c0_13] : memref<128x128xbf16, #tpu.memory_space<vmem>>, vector<128x128xbf16>
    %cst_14 = arith.constant dense<0.000000e+00> : vector<128x128xf32>
    %19 = tpu.matmul %17, %18, %cst_14 {dimension_numbers = #tpu.dot_dimension_numbers<[1], [0], [0], [1], [0, 0, 1, 1], [], []>} : vector<128x128xbf16>, vector<128x128xbf16>, vector<128x128xf32> -> vector<128x128xf32>
    %c0_15 = arith.constant 0 : index
    %c0_16 = arith.constant 0 : index
    %20 = vector.load %arg7[%c0_15, %c0_16] : memref<1x128xf32, #tpu.memory_space<vmem>>, vector<1x128xf32>
    %21 = vector.broadcast %20 : vector<1x128xf32> to vector<128x128xf32>
    %22 = arith.addf %19, %21 : vector<128x128xf32>
    %c0_17 = arith.constant 0 : index
    %c0_18 = arith.constant 0 : index
    %23 = vector.load %arg8[%c0_17, %c0_18] : memref<128x128xf32, #tpu.memory_space<vmem>>, vector<128x128xf32>
    tpu.vector_store %arg8[%c0_17, %c0_18], %22 {strides = array<i32>} : memref<128x128xf32, #tpu.memory_space<vmem>>, vector<128x128xf32>,
    return
  }
  func.func @transform_0(%arg0: i32) -> (i32, i32) {
    %c0_i32 = arith.constant 0 : i32
    %c0_i32_0 = arith.constant 0 : i32
    return %arg0, %c0_i32 : i32, i32
  }
  func.func @transform_1(%arg0: i32) -> (i32, i32) {
    %c0_i32 = arith.constant 0 : i32
    %c0_i32_0 = arith.constant 0 : i32
    %c0_i32_1 = arith.constant 0 : i32
    return %c0_i32, %c0_i32_0 : i32, i32
  }
  func.func @transform_2(%arg0: i32) -> (i32, i32) {
    %c0_i32 = arith.constant 0 : i32
    %c0_i32_0 = arith.constant 0 : i32
    %c0_i32_1 = arith.constant 0 : i32
    return %c0_i32, %c0_i32_0 : i32, i32
  }
  func.func @transform_3(%arg0: i32) -> (i32, i32) {
    %c0_i32 = arith.constant 0 : i32
    %c0_i32_0 = arith.constant 0 : i32
    %c0_i32_1 = arith.constant 0 : i32
    return %c0_i32, %c0_i32_0 : i32, i32
  }
  func.func @transform_4(%arg0: i32) -> (i32, i32) {
    %c0_i32 = arith.constant 0 : i32
    %c0_i32_0 = arith.constant 0 : i32
    %c0_i32_1 = arith.constant 0 : i32
    return %c0_i32, %c0_i32_0 : i32, i32
  }
  func.func @transform_5(%arg0: i32) -> (i32, i32) {
    %c0_i32 = arith.constant 0 : i32
    %c0_i32_0 = arith.constant 0 : i32
    %c0_i32_1 = arith.constant 0 : i32
    return %c0_i32, %c0_i32_0 : i32, i32
  }
  func.func @transform_6(%arg0: i32) -> (i32, i32) {
    %c0_i32 = arith.constant 0 : i32
    %c0_i32_0 = arith.constant 0 : i32
    %c0_i32_1 = arith.constant 0 : i32
    return %c0_i32, %c0_i32_0 : i32, i32
  }
  func.func @transform_7(%arg0: i32) -> (i32, i32) {
    %c0_i32 = arith.constant 0 : i32
    %c0_i32_0 = arith.constant 0 : i32
    return %arg0, %c0_i32 : i32, i32
  }
}

module attributes {stable_mosaic.version = 11 : i64} {
  func.func @_mlp_kernel(%arg0: i32, %arg1: memref<128x32xf32, #tpu.memory_space<vmem>>, %arg2: memref<32x128xbf16, #tpu.memory_space<vmem>>, %arg3: memref<1x128xf32, #tpu.memory_space<vmem>>, %arg4: memref<128x128xbf16, #tpu.memory_space<vmem>>, %arg5: memref<1x128xf32, #tpu.memory_space<vmem>>, %arg6: memref<128x128xbf16, #tpu.memory_space<vmem>>, %arg7: memref<1x128xf32, #tpu.memory_space<vmem>>, %arg8: memref<128x128xf32, #tpu.memory_space<vmem>>) attributes {dimension_semantics = [#tpu.dimension_semantics<parallel>], iteration_bounds = array<i64: 1>, scalar_prefetch = 0 : i64, scratch_operands = 0 : i64, tpu.core_type = #tpu.core_type<tc>, window_params = [{transform_indices = @transform_0, window_bounds = array<i64: 128, 32>}, {pipeline_mode = #tpu.pipeline_mode<synchronous>, transform_indices = @transform_1, window_bounds = array<i64: 32, 128>}, {pipeline_mode = #tpu.pipeline_mode<synchronous>, transform_indices = @transform_2, window_bounds = array<i64: 1, 128>}, {pipeline_mode = #tpu.pipeline_mode<synchronous>, transform_indices = @transform_3, window_bounds = array<i64: 128, 128>}, {pipeline_mode = #tpu.pipeline_mode<synchronous>, transform_indices = @transform_4, window_bounds = array<i64: 1, 128>}, {pipeline_mode = #tpu.pipeline_mode<synchronous>, transform_indices = @transform_5, window_bounds = array<i64: 128, 128>}, {pipeline_mode = #tpu.pipeline_mode<synchronous>, transform_indices = @transform_6, window_bounds = array<i64: 1, 128>}, {transform_indices = @transform_7, window_bounds = array<i64: 128, 128>}]} {
    %c0 = arith.constant 0 : index
    %c0_0 = arith.constant 0 : index
    %0 = vector.load %arg1[%c0, %c0_0] : memref<128x32xf32, #tpu.memory_space<vmem>>, vector<128x32xf32>
    %1 = arith.truncf %0 : vector<128x32xf32> to vector<128x32xbf16>
    %c0_1 = arith.constant 0 : index
    %c0_2 = arith.constant 0 : index
    %2 = vector.load %arg2[%c0_1, %c0_2] : memref<32x128xbf16, #tpu.memory_space<vmem>>, vector<32x128xbf16>
    %cst = arith.constant dense<0.000000e+00> : vector<128x128xf32>
    %3 = tpu.matmul %1, %2, %cst {dimension_numbers = #tpu.dot_dimension_numbers<[1], [0], [0], [1], [0, 0, 1, 1], [], []>} : vector<128x32xbf16>, vector<32x128xbf16>, vector<128x128xf32> -> vector<128x128xf32>
    %c0_3 = arith.constant 0 : index
    %c0_4 = arith.constant 0 : index
    %4 = vector.load %arg3[%c0_3, %c0_4] : memref<1x128xf32, #tpu.memory_space<vmem>>, vector<1x128xf32>
    %5 = vector.broadcast %4 : vector<1x128xf32> to vector<128x128xf32>
    %6 = arith.addf %3, %5 : vector<128x128xf32>
    %cst_5 = arith.constant 0.000000e+00 : f32
    %7 = vector.broadcast %cst_5 : f32 to vector<128x128xf32>
    %8 = arith.maximumf %6, %7 : vector<128x128xf32>
    %9 = arith.truncf %8 : vector<128x128xf32> to vector<128x128xbf16>
    %c0_6 = arith.constant 0 : index
    %c0_7 = arith.constant 0 : index
    %10 = vector.load %arg4[%c0_6, %c0_7] : memref<128x128xbf16, #tpu.memory_space<vmem>>, vector<128x128xbf16>
    %cst_8 = arith.constant dense<0.000000e+00> : vector<128x128xf32>
    %11 = tpu.matmul %9, %10, %cst_8 {dimension_numbers = #tpu.dot_dimension_numbers<[1], [0], [0], [1], [0, 0, 1, 1], [], []>} : vector<128x128xbf16>, vector<128x128xbf16>, vector<128x128xf32> -> vector<128x128xf32>
    %c0_9 = arith.constant 0 : index
    %c0_10 = arith.constant 0 : index
    %12 = vector.load %arg5[%c0_9, %c0_10] : memref<1x128xf32, #tpu.memory_space<vmem>>, vector<1x128xf32>
    %13 = vector.broadcast %12 : vector<1x128xf32> to vector<128x128xf32>
    %14 = arith.addf %11, %13 : vector<128x128xf32>
    %cst_11 = arith.constant 0.000000e+00 : f32
    %15 = vector.broadcast %cst_11 : f32 to vector<128x128xf32>
    %16 = arith.maximumf %14, %15 : vector<128x128xf32>
    %17 = arith.truncf %16 : vector<128x128xf32> to vector<128x128xbf16>
    %c0_12 = arith.constant 0 : index
    %c0_13 = arith.constant 0 : index
    %18 = vector.load %arg6[%c0_12, %c0_13] : memref<128x128xbf16, #tpu.memory_space<vmem>>, vector<128x128xbf16>
    %cst_14 = arith.constant dense<0.000000e+00> : vector<128x128xf32>
    %19 = tpu.matmul %17, %18, %cst_14 {dimension_numbers = #tpu.dot_dimension_numbers<[1], [0], [0], [1], [0, 0, 1, 1], [], []>} : vector<128x128xbf16>, vector<128x128xbf16>, vector<128x128xf32> -> vector<128x128xf32>
    %c0_15 = arith.constant 0 : index
    %c0_16 = arith.constant 0 : index
    %20 = vector.load %arg7[%c0_15, %c0_16] : memref<1x128xf32, #tpu.memory_space<vmem>>, vector<1x128xf32>
    %21 = vector.broadcast %20 : vector<1x128xf32> to vector<128x128xf32>
    %22 = arith.addf %19, %21 : vector<128x128xf32>
    %c0_17 = arith.constant 0 : index
    %c0_18 = arith.constant 0 : index
    %23 = vector.load %arg8[%c0_17, %c0_18] : memref<128x128xf32, #tpu.memory_space<vmem>>, vector<128x128xf32>
    tpu.vector_store %arg8[%c0_17, %c0_18], %22 {strides = array<i32>} : memref<128x128xf32, #tpu.memory_space<vmem>>, vector<128x128xf32>,
    return
  }
  func.func @transform_0(%arg0: i32) -> (i32, i32) {
    %c0_i32 = arith.constant 0 : i32
    %c0_i32_0 = arith.constant 0 : i32
    return %arg0, %c0_i32 : i32, i32
  }
  func.func @transform_1(%arg0: i32) -> (i32, i32) {
    %c0_i32 = arith.constant 0 : i32
    %c0_i32_0 = arith.constant 0 : i32
    %c0_i32_1 = arith.constant 0 : i32
    return %c0_i32, %c0_i32_0 : i32, i32
  }
  func.func @transform_2(%arg0: i32) -> (i32, i32) {
    %c0_i32 = arith.constant 0 : i32
    %c0_i32_0 = arith.constant 0 : i32
    %c0_i32_1 = arith.constant 0 : i32
    return %c0_i32, %c0_i32_0 : i32, i32
  }
  func.func @transform_3(%arg0: i32) -> (i32, i32) {
    %c0_i32 = arith.constant 0 : i32
    %c0_i32_0 = arith.constant 0 : i32
    %c0_i32_1 = arith.constant 0 : i32
    return %c0_i32, %c0_i32_0 : i32, i32
  }
  func.func @transform_4(%arg0: i32) -> (i32, i32) {
    %c0_i32 = arith.constant 0 : i32
    %c0_i32_0 = arith.constant 0 : i32
    %c0_i32_1 = arith.constant 0 : i32
    return %c0_i32, %c0_i32_0 : i32, i32
  }
  func.func @transform_5(%arg0: i32) -> (i32, i32) {
    %c0_i32 = arith.constant 0 : i32
    %c0_i32_0 = arith.constant 0 : i32
    %c0_i32_1 = arith.constant 0 : i32
    return %c0_i32, %c0_i32_0 : i32, i32
  }
  func.func @transform_6(%arg0: i32) -> (i32, i32) {
    %c0_i32 = arith.constant 0 : i32
    %c0_i32_0 = arith.constant 0 : i32
    %c0_i32_1 = arith.constant 0 : i32
    return %c0_i32, %c0_i32_0 : i32, i32
  }
  func.func @transform_7(%arg0: i32) -> (i32, i32) {
    %c0_i32 = arith.constant 0 : i32
    %c0_i32_0 = arith.constant 0 : i32
    return %arg0, %c0_i32 : i32, i32
  }
}

</mosaic_0001>

<bundles_post_ra>
// kernel: tpu_custom_call.1
= control target key start
LH: loop header
LB: loop body
LE: loop exit
PB: predicated region body
PF: predicated region fallthrough
CT: control target
= control target key end

     0   :  { %s791_s0 = inlined_call_operand.vmem [shape: f32[128,32], index: 0, kind: input, shape index: {}]   ;;  %s792_s1 = inlined_call_operand.vmem [shape: bf16[32,128], index: 1, kind: input, shape index: {}]   ;;  %s793_s2 = inlined_call_operand.vmem [shape: f32[1,128], index: 2, kind: input, shape index: {}]   ;;  %s794_s3 = inlined_call_operand.vmem [shape: bf16[128,128], index: 3, kind: input, shape index: {}]   ;;  %s795_s4 = inlined_call_operand.vmem [shape: f32[1,128], index: 4, kind: input, shape index: {}]   ;;  %s796_s5 = inlined_call_operand.vmem [shape: bf16[128,128], index: 5, kind: input, shape index: {}]   ;;  %s797_s6 = inlined_call_operand.vmem [shape: f32[1,128], index: 6, kind: input, shape index: {}]   ;;  %s798_s7 = inlined_call_operand.hbm [shape: f32[128,128], index: 7, kind: output, shape index: {}]  }
   0x1   :  { %v543_v0 = vld [vmem:[%s792_s1 + $0x8] sm:$0xff]  ;;  %v542_v1 = vld [vmem:[%s792_s1] sm:$0xff] }
   0x2   :  { %103 = vmatpush.bf16.msra.mxu0 %v543_v0  ;;  %v28_v2 = vld [vmem:[%s791_s0] sm:$0xff]  ;;  %v29_v3 = vld [vmem:[%s791_s0 + $0x8] sm:$0xff] }
   0x3   :  { %12 = vsyncpa [#allocation3], 0  ;;  %v44_v4 = vpack.c.bf16 %v29_v3, %v28_v2  ;;  %vm72_vm0 = vcmask 261120   ;;  %v30_v5 = vld [vmem:[%s791_s0 + $0x10] sm:$0xff]  ;;  %v31_v6 = vld [vmem:[%s791_s0 + $0x18] sm:$0xff]  ;;  %s450_s24 = sshll.u32 %s798_s7, 4  ;;  %s451_s24 = int_to_ptr.hbm [resolvable:$true] %s450_s24 }
   0x4   :  { %v45_v7 = vpack.c.bf16 %v31_v6, %v30_v5  ;;  %v32_v8 = vld [vmem:[%s791_s0 + $0x20] sm:$0xff]  ;;  %v33_v9 = vld [vmem:[%s791_s0 + $0x28] sm:$0xff]  ;;  %v34_v11 = vld [vmem:[%s791_s0 + $0x30] sm:$0xff]  ;;  %s609_s25 = smov 128   ;;  %s610_s26 = smov 8  }
   0x5   :  { %v46_v10 = vpack.c.bf16 %v33_v9, %v32_v8  ;;  %v35_v12 = vld [vmem:[%s791_s0 + $0x38] sm:$0xff]  ;;  %v36_v14 = vld [vmem:[%s791_s0 + $0x40] sm:$0xff]  ;;  %v37_v15 = vld [vmem:[%s791_s0 + $0x48] sm:$0xff] }
   0x6   :  { %104 = vmatpush.bf16.msra.mxu0 %v542_v1  ;;  %v47_v13 = vpack.c.bf16 %v35_v12, %v34_v11  ;;  %v48_v16 = vpack.c.bf16 %v37_v15, %v36_v14  ;;  %v551_v17 = vld [vmem:[%s794_s3 + $0x38] sm:$0xff]  ;;  %v38_v18 = vld [vmem:[%s791_s0 + $0x50] sm:$0xff]  ;;  %v549_v22 = vld [vmem:[%s794_s3 + $0x28] sm:$0xff] }
   0x7   :  { %238 = vmatpush.bf16.msra.mxu1 %v551_v17  ;;  %560 = vmatpush.bf16.msra.mxu3 %v551_v17  ;;  %v39_v19 = vld [vmem:[%s791_s0 + $0x58] sm:$0xff]  ;;  %v550_v21 = vld [vmem:[%s794_s3 + $0x30] sm:$0xff]  ;;  %v548_v23 = vld [vmem:[%s794_s3 + $0x20] sm:$0xff] }
   0x8   :  { %v49_v20 = vpack.c.bf16 %v39_v19, %v38_v18  ;;  %v40_v24 = vld [vmem:[%s791_s0 + $0x60] sm:$0xff]  ;;  %v41_v25 = vld [vmem:[%s791_s0 + $0x68] sm:$0xff]  ;;  %v547_v26 = vld [vmem:[%s794_s3 + $0x18] sm:$0xff] }
   0x9   :  { %470 = vmatmul.msk.bf16.vlgmr.msra.gmra.mxu0 %vm72_vm0, %v44_v4  ;;  %v50_v27 = vpack.c.bf16 %v41_v25, %v40_v24  ;;  %v546_v28 = vld [vmem:[%s794_s3 + $0x10] sm:$0xff]  ;;  %v545_v29 = vld [vmem:[%s794_s3 + $0x8] sm:$0xff]  ;;  %v544_v30 = vld [vmem:[%s794_s3] sm:$0xff] }
   0xa   :  { %v42_v31 = vld [vmem:[%s791_s0 + $0x70] sm:$0xff]  ;;  %v43_v32 = vld [vmem:[%s791_s0 + $0x78] sm:$0xff]  ;;  %v740_v35 = vld [vmem:[%s793_s2] ss:$0 sm:$0xff] }
   0xb   :  { %239 = vmatpush.bf16.msra.mxu1 %v550_v21  ;;  %561 = vmatpush.bf16.msra.mxu3 %v550_v21  ;;  %v51_v33 = vpack.c.bf16 %v43_v32, %v42_v31  ;;  %v558_v14 = vld [vmem:[%s796_s5 + $0x30] sm:$0xff]  ;;  %v556_v17 = vld [vmem:[%s796_s5 + $0x20] sm:$0xff]  ;;  %v555_v21 = vld [vmem:[%s796_s5 + $0x18] sm:$0xff] }
   0xc   :  { %v554_v25 = vld [vmem:[%s796_s5 + $0x10] sm:$0xff] }
   0xf   :  { %240 = vmatpush.bf16.msra.mxu1 %v549_v22  ;;  %562 = vmatpush.bf16.msra.mxu3 %v549_v22 }
  0x13   :  { %241 = vmatpush.bf16.msra.mxu1 %v548_v23  ;;  %563 = vmatpush.bf16.msra.mxu3 %v548_v23 }
  0x17   :  { %242 = vmatpush.bf16.msra.mxu1 %v547_v26  ;;  %564 = vmatpush.bf16.msra.mxu3 %v547_v26 }
  0x19   :  { %471 = vmatmul.msk.bf16.gmra.mxu0 %vm72_vm0, %v45_v7 }
  0x1b   :  { %243 = vmatpush.bf16.msra.mxu1 %v546_v28  ;;  %565 = vmatpush.bf16.msra.mxu3 %v546_v28  ;;  %v552_v28 = vld [vmem:[%s796_s5] sm:$0xff] }
  0x1f   :  { %244 = vmatpush.bf16.msra.mxu1 %v545_v29  ;;  %566 = vmatpush.bf16.msra.mxu3 %v545_v29 }
  0x23   :  { %245 = vmatpush.bf16.msra.mxu1 %v544_v30  ;;  %567 = vmatpush.bf16.msra.mxu3 %v544_v30 }
  0x29   :  { %472 = vmatmul.msk.bf16.gmra.mxu0 %vm72_vm0, %v46_v10  ;;  %v559_v10 = vld [vmem:[%s796_s5 + $0x38] sm:$0xff] }
  0x2a   :  { %379 = vmatpush.bf16.msra.mxu2 %v559_v10  ;;  %568 = vmatpush.bf16.msrb.mxu3 %v559_v10 }
  0x2e   :  { %380 = vmatpush.bf16.msra.mxu2 %v558_v14  ;;  %569 = vmatpush.bf16.msrb.mxu3 %v558_v14 }
  0x39   :  { %473 = vmatmul.msk.bf16.gmra.mxu0 %vm72_vm0, %v47_v13 }
  0x49   :  { %474 = vmatmul.msk.bf16.gmra.mxu0 %vm72_vm0, %v48_v16  ;;  %v557_v16 = vld [vmem:[%s796_s5 + $0x28] sm:$0xff] }
  0x4a   :  { %381 = vmatpush.bf16.msra.mxu2 %v557_v16  ;;  %570 = vmatpush.bf16.msrb.mxu3 %v557_v16 }
  0x4e   :  { %382 = vmatpush.bf16.msra.mxu2 %v556_v17  ;;  %571 = vmatpush.bf16.msrb.mxu3 %v556_v17 }
  0x52   :  { %383 = vmatpush.bf16.msra.mxu2 %v555_v21  ;;  %572 = vmatpush.bf16.msrb.mxu3 %v555_v21 }
  0x56   :  { %384 = vmatpush.bf16.msra.mxu2 %v554_v25  ;;  %573 = vmatpush.bf16.msrb.mxu3 %v554_v25 }
  0x59   :  { %475 = vmatmul.msk.bf16.gmra.mxu0 %vm72_vm0, %v49_v20 }
  0x69   :  { %476 = vmatmul.msk.bf16.gmra.mxu0 %vm72_vm0, %v50_v27  ;;  %v553_v27 = vld [vmem:[%s796_s5 + $0x8] sm:$0xff] }
  0x6a   :  { %385 = vmatpush.bf16.msra.mxu2 %v553_v27  ;;  %574 = vmatpush.bf16.msrb.mxu3 %v553_v27 }
  0x6e   :  { %386 = vmatpush.bf16.msra.mxu2 %v552_v28  ;;  %575 = vmatpush.bf16.msrb.mxu3 %v552_v28  ;;  %v581_v28 = vld [vmem:[%s797_s6] ss:$0 sm:$0xff]  ;;  %s608_s6 = smov [#allocation2]  }
  0x6f   :  { %s448_s21 = sshll.u32 %s608_s6, 4  ;;  %s449_s21 = int_to_ptr.vmem [resolvable:$true] %s448_s21 }
  0x79   :  { %477 = vmatmul.msk.bf16.gmra.mxu0 %vm72_vm0, %v51_v33 }
  0x86   :  { %v106_v34 = vpop.f32.mrf.mxu0 }
  0x87   :  { %v107_v36 = vadd.f32 %v740_v35, %v106_v34 }
  0x89   :  { %v146_v39 = vmax.f32 %v107_v36, 0.0 }
  0x8e   :  { %v108_v37 = vpop.f32.mrf.mxu0 }
  0x8f   :  { %v109_v38 = vadd.f32 %v740_v35, %v108_v37  ;;  %v580_v37 = vld [vmem:[%s795_s4] ss:$0 sm:$0xff] }
  0x91   :  { %v147_v40 = vmax.f32 %v109_v38, 0.0 }
  0x93   :  { %v162_v41 = vpack.c.bf16 %v147_v40, %v146_v39 }
  0x95   :  { %246 = vmatmul.bf16.vlgmr.msra.gmra.mxu1 %v162_v41 }
  0x96   :  { %v111_v42 = vpop.f32.mrf.mxu0 }
  0x97   :  { %v112_v43 = vadd.f32 %v740_v35, %v111_v42 }
  0x99   :  { %v148_v46 = vmax.f32 %v112_v43, 0.0 }
  0x9e   :  { %v113_v44 = vpop.f32.mrf.mxu0 }
  0x9f   :  { %v114_v45 = vadd.f32 %v740_v35, %v113_v44 }
  0xa1   :  { %v149_v47 = vmax.f32 %v114_v45, 0.0 }
  0xa3   :  { %v163_v48 = vpack.c.bf16 %v149_v47, %v148_v46 }
  0xa5   :  { %251 = vmatmul.bf16.gmra.mxu1 %v163_v48 }
  0xa6   :  { %v116_v49 = vpop.f32.mrf.mxu0 }
  0xa7   :  { %v117_v50 = vadd.f32 %v740_v35, %v116_v49 }
  0xa9   :  { %v150_v53 = vmax.f32 %v117_v50, 0.0 }
  0xae   :  { %v118_v51 = vpop.f32.mrf.mxu0 }
  0xaf   :  { %v119_v52 = vadd.f32 %v740_v35, %v118_v51 }
  0xb1   :  { %v151_v54 = vmax.f32 %v119_v52, 0.0 }
  0xb3   :  { %v164_v55 = vpack.c.bf16 %v151_v54, %v150_v53 }
  0xb5   :  { %256 = vmatmul.bf16.gmra.mxu1 %v164_v55 }
  0xb6   :  { %v121_v56 = vpop.f32.mrf.mxu0 }
  0xb7   :  { %v122_v57 = vadd.f32 %v740_v35, %v121_v56 }
  0xb9   :  { %v152_v60 = vmax.f32 %v122_v57, 0.0 }
  0xbe   :  { %v123_v58 = vpop.f32.mrf.mxu0 }
  0xbf   :  { %v124_v59 = vadd.f32 %v740_v35, %v123_v58 }
  0xc1   :  { %v153_v61 = vmax.f32 %v124_v59, 0.0 }
  0xc3   :  { %v165_v62 = vpack.c.bf16 %v153_v61, %v152_v60 }
  0xc5   :  { %261 = vmatmul.bf16.gmra.mxu1 %v165_v62 }
  0xc6   :  { %v126_v63 = vpop.f32.mrf.mxu0 }
  0xc7   :  { %v127_v0 = vadd.f32 %v740_v35, %v126_v63 }
  0xc9   :  { %v154_v3 = vmax.f32 %v127_v0, 0.0 }
  0xce   :  { %v128_v1 = vpop.f32.mrf.mxu0 }
  0xcf   :  { %v129_v2 = vadd.f32 %v740_v35, %v128_v1 }
  0xd1   :  { %v155_v4 = vmax.f32 %v129_v2, 0.0 }
  0xd3   :  { %v166_v5 = vpack.c.bf16 %v155_v4, %v154_v3 }
  0xd5   :  { %266 = vmatmul.bf16.gmra.mxu1 %v166_v5 }
  0xd6   :  { %v131_v6 = vpop.f32.mrf.mxu0 }
  0xd7   :  { %v132_v7 = vadd.f32 %v740_v35, %v131_v6 }
  0xd9   :  { %v156_v11 = vmax.f32 %v132_v7, 0.0 }
  0xde   :  { %v133_v8 = vpop.f32.mrf.mxu0 }
  0xdf   :  { %v134_v9 = vadd.f32 %v740_v35, %v133_v8 }
  0xe1   :  { %v157_v12 = vmax.f32 %v134_v9, 0.0 }
  0xe3   :  { %v167_v13 = vpack.c.bf16 %v157_v12, %v156_v11 }
  0xe5   :  { %271 = vmatmul.bf16.gmra.mxu1 %v167_v13 }
  0xe6   :  { %v136_v15 = vpop.f32.mrf.mxu0 }
  0xe7   :  { %v137_v18 = vadd.f32 %v740_v35, %v136_v15 }
  0xe9   :  { %v158_v22 = vmax.f32 %v137_v18, 0.0 }
  0xee   :  { %v138_v19 = vpop.f32.mrf.mxu0 }
  0xef   :  { %v139_v20 = vadd.f32 %v740_v35, %v138_v19 }
  0xf1   :  { %v159_v23 = vmax.f32 %v139_v20, 0.0 }
  0xf3   :  { %v168_v24 = vpack.c.bf16 %v159_v23, %v158_v22 }
  0xf5   :  { %276 = vmatmul.bf16.vlgmr.msra.gmra.mxu3 %v168_v24 }
  0xf6   :  { %v141_v26 = vpop.f32.mrf.mxu0 }
  0xf7   :  { %v142_v29 = vadd.f32 %v740_v35, %v141_v26 }
  0xf9   :  { %v160_v32 = vmax.f32 %v142_v29, 0.0 }
  0xfe   :  { %v143_v30 = vpop.f32.mrf.mxu0 }
  0xff   :  { %v144_v31 = vadd.f32 %v740_v35, %v143_v30 }
 0x101   :  { %v161_v33 = vmax.f32 %v144_v31, 0.0 }
 0x103   :  { %v169_v34 = vpack.c.bf16 %v161_v33, %v160_v32 }
 0x105   :  { %281 = vmatmul.bf16.gmra.mxu3 %v169_v34 }
 0x112   :  { %v247_v36 = vpop.f32.mrf.mxu1 }
 0x113   :  { %v248_v38 = vadd.f32 %v580_v37, %v247_v36 }
 0x115   :  { %v287_v41 = vmax.f32 %v248_v38, 0.0 }
 0x11a   :  { %v249_v39 = vpop.f32.mrf.mxu1 }
 0x11b   :  { %v250_v40 = vadd.f32 %v580_v37, %v249_v39 }
 0x11d   :  { %v288_v42 = vmax.f32 %v250_v40, 0.0 }
 0x11f   :  { %v303_v43 = vpack.c.bf16 %v288_v42, %v287_v41 }
 0x121   :  { %387 = vmatmul.bf16.vlgmr.msra.gmra.mxu2 %v303_v43 }
 0x122   :  { %v252_v44 = vpop.f32.mrf.mxu1 }
 0x123   :  { %v253_v45 = vadd.f32 %v580_v37, %v252_v44 }
 0x125   :  { %v289_v47 = vmax.f32 %v253_v45, 0.0 }
 0x12a   :  { %v254_v46 = vpop.f32.mrf.mxu1 }
 0x12b   :  { %v255_v35 = vadd.f32 %v580_v37, %v254_v46 }
 0x12d   :  { %v290_v48 = vmax.f32 %v255_v35, 0.0 }
 0x12f   :  { %v304_v49 = vpack.c.bf16 %v290_v48, %v289_v47 }
 0x131   :  { %392 = vmatmul.bf16.gmra.mxu2 %v304_v49 }
 0x132   :  { %v257_v50 = vpop.f32.mrf.mxu1 }
 0x133   :  { %v258_v51 = vadd.f32 %v580_v37, %v257_v50 }
 0x135   :  { %v291_v54 = vmax.f32 %v258_v51, 0.0 }
 0x13a   :  { %v259_v52 = vpop.f32.mrf.mxu1 }
 0x13b   :  { %v260_v53 = vadd.f32 %v580_v37, %v259_v52 }
 0x13d   :  { %v292_v55 = vmax.f32 %v260_v53, 0.0 }
 0x13f   :  { %v305_v56 = vpack.c.bf16 %v292_v55, %v291_v54 }
 0x141   :  { %397 = vmatmul.bf16.gmra.mxu2 %v305_v56 }
 0x142   :  { %v262_v57 = vpop.f32.mrf.mxu1 }
 0x143   :  { %v263_v58 = vadd.f32 %v580_v37, %v262_v57 }
 0x145   :  { %v293_v61 = vmax.f32 %v263_v58, 0.0 }
 0x14a   :  { %v264_v59 = vpop.f32.mrf.mxu1 }
 0x14b   :  { %v265_v60 = vadd.f32 %v580_v37, %v264_v59 }
 0x14d   :  { %v294_v62 = vmax.f32 %v265_v60, 0.0 }
 0x14f   :  { %v306_v63 = vpack.c.bf16 %v294_v62, %v293_v61 }
 0x151   :  { %402 = vmatmul.bf16.gmra.mxu2 %v306_v63 }
 0x152   :  { %v267_v0 = vpop.f32.mrf.mxu1 }
 0x153   :  { %v268_v1 = vadd.f32 %v580_v37, %v267_v0 }
 0x155   :  { %v295_v4 = vmax.f32 %v268_v1, 0.0 }
 0x15a   :  { %v269_v2 = vpop.f32.mrf.mxu1 }
 0x15b   :  { %v270_v3 = vadd.f32 %v580_v37, %v269_v2 }
 0x15d   :  { %v296_v5 = vmax.f32 %v270_v3, 0.0 }
 0x15f   :  { %v307_v6 = vpack.c.bf16 %v296_v5, %v295_v4 }
 0x161   :  { %407 = vmatmul.bf16.gmra.mxu2 %v307_v6 }
 0x162   :  { %v272_v7 = vpop.f32.mrf.mxu1 }
 0x163   :  { %v273_v8 = vadd.f32 %v580_v37, %v272_v7 }
 0x165   :  { %v297_v11 = vmax.f32 %v273_v8, 0.0 }
 0x16a   :  { %v274_v9 = vpop.f32.mrf.mxu1 }
 0x16b   :  { %v275_v10 = vadd.f32 %v580_v37, %v274_v9 }
 0x16d   :  { %v298_v12 = vmax.f32 %v275_v10, 0.0 }
 0x16f   :  { %v308_v13 = vpack.c.bf16 %v298_v12, %v297_v11 }
 0x171   :  { %412 = vmatmul.bf16.gmra.mxu2 %v308_v13 }
 0x178   :  { %v277_v14 = vpop.f32.mrf.mxu3 }
 0x179   :  { %v278_v15 = vadd.f32 %v580_v37, %v277_v14 }
 0x17b   :  { %v299_v18 = vmax.f32 %v278_v15, 0.0 }
 0x180   :  { %v279_v16 = vpop.f32.mrf.mxu3 }
 0x181   :  { %v280_v17 = vadd.f32 %v580_v37, %v279_v16 }
 0x183   :  { %v300_v19 = vmax.f32 %v280_v17, 0.0 }
 0x185   :  { %v309_v20 = vpack.c.bf16 %v300_v19, %v299_v18 }
 0x187   :  { %417 = vmatmul.bf16.vlgmr.msrb.gmra.mxu3 %v309_v20 }
 0x188   :  { %v282_v21 = vpop.f32.mrf.mxu3 }
 0x189   :  { %v283_v22 = vadd.f32 %v580_v37, %v282_v21 }
 0x18b   :  { %v301_v25 = vmax.f32 %v283_v22, 0.0 }
 0x190   :  { %v284_v23 = vpop.f32.mrf.mxu3 }
 0x191   :  { %v285_v24 = vadd.f32 %v580_v37, %v284_v23 }
 0x193   :  { %v302_v26 = vmax.f32 %v285_v24, 0.0 }
 0x195   :  { %v310_v27 = vpack.c.bf16 %v302_v26, %v301_v25 }
 0x197   :  { %422 = vmatmul.bf16.gmra.mxu3 %v310_v27 }
 0x1a4   :  { %v388_v29 = vpop.f32.mrf.mxu2 }
 0x1a5   :  { %v389_v30 = vadd.f32 %v581_v28, %v388_v29 }
 0x1a7   :  { %428 = vst [vmem:[#allocation2] sm:$0xff] %v389_v30 }
 0x1ac   :  { %v390_v31 = vpop.f32.mrf.mxu2 }
 0x1ad   :  { %v391_v32 = vadd.f32 %v581_v28, %v390_v31 }
 0x1af   :  { %429 = vst [vmem:[#allocation2 + $0x8] sm:$0xff] %v391_v32 }
 0x1b4   :  { %v393_v33 = vpop.f32.mrf.mxu2 }
 0x1b5   :  { %v394_v34 = vadd.f32 %v581_v28, %v393_v33 }
 0x1b7   :  { %430 = vst [vmem:[#allocation2 + $0x10] sm:$0xff] %v394_v34 }
 0x1bc   :  { %v395_v36 = vpop.f32.mrf.mxu2 }
 0x1bd   :  { %v396_v38 = vadd.f32 %v581_v28, %v395_v36 }
 0x1bf   :  { %431 = vst [vmem:[#allocation2 + $0x18] sm:$0xff] %v396_v38 }
 0x1c4   :  { %v398_v37 = vpop.f32.mrf.mxu2 }
 0x1c5   :  { %v399_v39 = vadd.f32 %v581_v28, %v398_v37 }
 0x1c7   :  { %432 = vst [vmem:[#allocation2 + $0x20] sm:$0xff] %v399_v39 }
 0x1cc   :  { %v400_v40 = vpop.f32.mrf.mxu2 }
 0x1cd   :  { %v401_v41 = vadd.f32 %v581_v28, %v400_v40 }
 0x1cf   :  { %433 = vst [vmem:[#allocation2 + $0x28] sm:$0xff] %v401_v41 }
 0x1d4   :  { %v403_v42 = vpop.f32.mrf.mxu2 }
 0x1d5   :  { %v404_v43 = vadd.f32 %v581_v28, %v403_v42 }
 0x1d7   :  { %434 = vst [vmem:[#allocation2 + $0x30] sm:$0xff] %v404_v43 }
 0x1dc   :  { %v405_v44 = vpop.f32.mrf.mxu2 }
 0x1dd   :  { %v406_v45 = vadd.f32 %v581_v28, %v405_v44 }
 0x1df   :  { %435 = vst [vmem:[#allocation2 + $0x38] sm:$0xff] %v406_v45 }
 0x1e4   :  { %v408_v46 = vpop.f32.mrf.mxu2 }
 0x1e5   :  { %v409_v35 = vadd.f32 %v581_v28, %v408_v46 }
 0x1e7   :  { %436 = vst [vmem:[#allocation2 + $0x40] sm:$0xff] %v409_v35 }
 0x1ec   :  { %v410_v47 = vpop.f32.mrf.mxu2 }
 0x1ed   :  { %v411_v48 = vadd.f32 %v581_v28, %v410_v47 }
 0x1ef   :  { %437 = vst [vmem:[#allocation2 + $0x48] sm:$0xff] %v411_v48 }
 0x1f4   :  { %v413_v49 = vpop.f32.mrf.mxu2 }
 0x1f5   :  { %v414_v50 = vadd.f32 %v581_v28, %v413_v49 }
 0x1f7   :  { %438 = vst [vmem:[#allocation2 + $0x50] sm:$0xff] %v414_v50 }
 0x1fc   :  { %v415_v51 = vpop.f32.mrf.mxu2 }
 0x1fd   :  { %v416_v52 = vadd.f32 %v581_v28, %v415_v51 }
 0x1ff   :  { %439 = vst [vmem:[#allocation2 + $0x58] sm:$0xff] %v416_v52 }
 0x20a   :  { %v418_v53 = vpop.f32.mrf.mxu3 }
 0x20b   :  { %v419_v54 = vadd.f32 %v581_v28, %v418_v53 }
 0x20d   :  { %440 = vst [vmem:[#allocation2 + $0x60] sm:$0xff] %v419_v54 }
 0x212   :  { %v420_v55 = vpop.f32.mrf.mxu3 }
 0x213   :  { %v421_v56 = vadd.f32 %v581_v28, %v420_v55 }
 0x215   :  { %441 = vst [vmem:[#allocation2 + $0x68] sm:$0xff] %v421_v56 }
 0x21a   :  { %v423_v57 = vpop.f32.mrf.mxu3 }
 0x21b   :  { %v424_v58 = vadd.f32 %v581_v28, %v423_v57 }
 0x21d   :  { %442 = vst [vmem:[#allocation2 + $0x70] sm:$0xff] %v424_v58 }
 0x222   :  { %v425_v59 = vpop.f32.mrf.mxu3 }
 0x223   :  { %v426_v60 = vadd.f32 %v581_v28, %v425_v59 }
 0x225   :  { %443 = vst [vmem:[#allocation2 + $0x78] sm:$0xff] %v426_v60 }
 0x226   :  { %456 = dma.vmem_to_hbm [thread:$0]  %s449_s21, 2048, %s451_s24, [#allocation3], %s609_s25, %s609_s25, %s610_s26  }
 0x227   :  { %606 = dma.done.wait [#allocation3], 2048  }
 0x228   :  { %607 = vsyncadd [#allocation3], 4294965248 }
 0x229   :  { %461 = vsyncpa [#allocation3], 1 }

// kernel: tpu_custom_call.1
= control target key start
LH: loop header
LB: loop body
LE: loop exit
PB: predicated region body
PF: predicated region fallthrough
CT: control target
= control target key end

     0   :  { %s791_s0 = inlined_call_operand.vmem [shape: f32[128,32], index: 0, kind: input, shape index: {}]   ;;  %s792_s1 = inlined_call_operand.vmem [shape: bf16[32,128], index: 1, kind: input, shape index: {}]   ;;  %s793_s2 = inlined_call_operand.vmem [shape: f32[1,128], index: 2, kind: input, shape index: {}]   ;;  %s794_s3 = inlined_call_operand.vmem [shape: bf16[128,128], index: 3, kind: input, shape index: {}]   ;;  %s795_s4 = inlined_call_operand.vmem [shape: f32[1,128], index: 4, kind: input, shape index: {}]   ;;  %s796_s5 = inlined_call_operand.vmem [shape: bf16[128,128], index: 5, kind: input, shape index: {}]   ;;  %s797_s6 = inlined_call_operand.vmem [shape: f32[1,128], index: 6, kind: input, shape index: {}]   ;;  %s798_s7 = inlined_call_operand.hbm [shape: f32[128,128], index: 7, kind: output, shape index: {}]  }
   0x1   :  { %v543_v0 = vld [vmem:[%s792_s1 + $0x8] sm:$0xff]  ;;  %v542_v1 = vld [vmem:[%s792_s1] sm:$0xff] }
   0x2   :  { %103 = vmatpush.bf16.msra.mxu0 %v543_v0  ;;  %v28_v2 = vld [vmem:[%s791_s0] sm:$0xff]  ;;  %v29_v3 = vld [vmem:[%s791_s0 + $0x8] sm:$0xff] }
   0x3   :  { %12 = vsyncpa [#allocation3], 0  ;;  %v44_v4 = vpack.c.bf16 %v29_v3, %v28_v2  ;;  %vm72_vm0 = vcmask 261120   ;;  %v30_v5 = vld [vmem:[%s791_s0 + $0x10] sm:$0xff]  ;;  %v31_v6 = vld [vmem:[%s791_s0 + $0x18] sm:$0xff]  ;;  %s450_s24 = sshll.u32 %s798_s7, 4  ;;  %s451_s24 = int_to_ptr.hbm [resolvable:$true] %s450_s24 }
   0x4   :  { %v45_v7 = vpack.c.bf16 %v31_v6, %v30_v5  ;;  %v32_v8 = vld [vmem:[%s791_s0 + $0x20] sm:$0xff]  ;;  %v33_v9 = vld [vmem:[%s791_s0 + $0x28] sm:$0xff]  ;;  %v34_v11 = vld [vmem:[%s791_s0 + $0x30] sm:$0xff]  ;;  %s609_s25 = smov 128   ;;  %s610_s26 = smov 8  }
   0x5   :  { %v46_v10 = vpack.c.bf16 %v33_v9, %v32_v8  ;;  %v35_v12 = vld [vmem:[%s791_s0 + $0x38] sm:$0xff]  ;;  %v36_v14 = vld [vmem:[%s791_s0 + $0x40] sm:$0xff]  ;;  %v37_v15 = vld [vmem:[%s791_s0 + $0x48] sm:$0xff] }
   0x6   :  { %104 = vmatpush.bf16.msra.mxu0 %v542_v1  ;;  %v47_v13 = vpack.c.bf16 %v35_v12, %v34_v11  ;;  %v48_v16 = vpack.c.bf16 %v37_v15, %v36_v14  ;;  %v551_v17 = vld [vmem:[%s794_s3 + $0x38] sm:$0xff]  ;;  %v38_v18 = vld [vmem:[%s791_s0 + $0x50] sm:$0xff]  ;;  %v549_v22 = vld [vmem:[%s794_s3 + $0x28] sm:$0xff] }
   0x7   :  { %238 = vmatpush.bf16.msra.mxu1 %v551_v17  ;;  %560 = vmatpush.bf16.msra.mxu3 %v551_v17  ;;  %v39_v19 = vld [vmem:[%s791_s0 + $0x58] sm:$0xff]  ;;  %v550_v21 = vld [vmem:[%s794_s3 + $0x30] sm:$0xff]  ;;  %v548_v23 = vld [vmem:[%s794_s3 + $0x20] sm:$0xff] }
   0x8   :  { %v49_v20 = vpack.c.bf16 %v39_v19, %v38_v18  ;;  %v40_v24 = vld [vmem:[%s791_s0 + $0x60] sm:$0xff]  ;;  %v41_v25 = vld [vmem:[%s791_s0 + $0x68] sm:$0xff]  ;;  %v547_v26 = vld [vmem:[%s794_s3 + $0x18] sm:$0xff] }
   0x9   :  { %470 = vmatmul.msk.bf16.vlgmr.msra.gmra.mxu0 %vm72_vm0, %v44_v4  ;;  %v50_v27 = vpack.c.bf16 %v41_v25, %v40_v24  ;;  %v546_v28 = vld [vmem:[%s794_s3 + $0x10] sm:$0xff]  ;;  %v545_v29 = vld [vmem:[%s794_s3 + $0x8] sm:$0xff]  ;;  %v544_v30 = vld [vmem:[%s794_s3] sm:$0xff] }
   0xa   :  { %v42_v31 = vld [vmem:[%s791_s0 + $0x70] sm:$0xff]  ;;  %v43_v32 = vld [vmem:[%s791_s0 + $0x78] sm:$0xff]  ;;  %v740_v35 = vld [vmem:[%s793_s2] ss:$0 sm:$0xff] }
   0xb   :  { %239 = vmatpush.bf16.msra.mxu1 %v550_v21  ;;  %561 = vmatpush.bf16.msra.mxu3 %v550_v21  ;;  %v51_v33 = vpack.c.bf16 %v43_v32, %v42_v31  ;;  %v558_v14 = vld [vmem:[%s796_s5 + $0x30] sm:$0xff]  ;;  %v556_v17 = vld [vmem:[%s796_s5 + $0x20] sm:$0xff]  ;;  %v555_v21 = vld [vmem:[%s796_s5 + $0x18] sm:$0xff] }
   0xc   :  { %v554_v25 = vld [vmem:[%s796_s5 + $0x10] sm:$0xff] }
   0xf   :  { %240 = vmatpush.bf16.msra.mxu1 %v549_v22  ;;  %562 = vmatpush.bf16.msra.mxu3 %v549_v22 }
  0x13   :  { %241 = vmatpush.bf16.msra.mxu1 %v548_v23  ;;  %563 = vmatpush.bf16.msra.mxu3 %v548_v23 }
  0x17   :  { %242 = vmatpush.bf16.msra.mxu1 %v547_v26  ;;  %564 = vmatpush.bf16.msra.mxu3 %v547_v26 }
  0x19   :  { %471 = vmatmul.msk.bf16.gmra.mxu0 %vm72_vm0, %v45_v7 }
  0x1b   :  { %243 = vmatpush.bf16.msra.mxu1 %v546_v28  ;;  %565 = vmatpush.bf16.msra.mxu3 %v546_v28  ;;  %v552_v28 = vld [vmem:[%s796_s5] sm:$0xff] }
  0x1f   :  { %244 = vmatpush.bf16.msra.mxu1 %v545_v29  ;;  %566 = vmatpush.bf16.msra.mxu3 %v545_v29 }
  0x23   :  { %245 = vmatpush.bf16.msra.mxu1 %v544_v30  ;;  %567 = vmatpush.bf16.msra.mxu3 %v544_v30 }
  0x29   :  { %472 = vmatmul.msk.bf16.gmra.mxu0 %vm72_vm0, %v46_v10  ;;  %v559_v10 = vld [vmem:[%s796_s5 + $0x38] sm:$0xff] }
  0x2a   :  { %379 = vmatpush.bf16.msra.mxu2 %v559_v10  ;;  %568 = vmatpush.bf16.msrb.mxu3 %v559_v10 }
  0x2e   :  { %380 = vmatpush.bf16.msra.mxu2 %v558_v14  ;;  %569 = vmatpush.bf16.msrb.mxu3 %v558_v14 }
  0x39   :  { %473 = vmatmul.msk.bf16.gmra.mxu0 %vm72_vm0, %v47_v13 }
  0x49   :  { %474 = vmatmul.msk.bf16.gmra.mxu0 %vm72_vm0, %v48_v16  ;;  %v557_v16 = vld [vmem:[%s796_s5 + $0x28] sm:$0xff] }
  0x4a   :  { %381 = vmatpush.bf16.msra.mxu2 %v557_v16  ;;  %570 = vmatpush.bf16.msrb.mxu3 %v557_v16 }
  0x4e   :  { %382 = vmatpush.bf16.msra.mxu2 %v556_v17  ;;  %571 = vmatpush.bf16.msrb.mxu3 %v556_v17 }
  0x52   :  { %383 = vmatpush.bf16.msra.mxu2 %v555_v21  ;;  %572 = vmatpush.bf16.msrb.mxu3 %v555_v21 }
  0x56   :  { %384 = vmatpush.bf16.msra.mxu2 %v554_v25  ;;  %573 = vmatpush.bf16.msrb.mxu3 %v554_v25 }
  0x59   :  { %475 = vmatmul.msk.bf16.gmra.mxu0 %vm72_vm0, %v49_v20 }
  0x69   :  { %476 = vmatmul.msk.bf16.gmra.mxu0 %vm72_vm0, %v50_v27  ;;  %v553_v27 = vld [vmem:[%s796_s5 + $0x8] sm:$0xff] }
  0x6a   :  { %385 = vmatpush.bf16.msra.mxu2 %v553_v27  ;;  %574 = vmatpush.bf16.msrb.mxu3 %v553_v27 }
  0x6e   :  { %386 = vmatpush.bf16.msra.mxu2 %v552_v28  ;;  %575 = vmatpush.bf16.msrb.mxu3 %v552_v28  ;;  %v581_v28 = vld [vmem:[%s797_s6] ss:$0 sm:$0xff]  ;;  %s608_s6 = smov [#allocation2]  }
  0x6f   :  { %s448_s21 = sshll.u32 %s608_s6, 4  ;;  %s449_s21 = int_to_ptr.vmem [resolvable:$true] %s448_s21 }
  0x79   :  { %477 = vmatmul.msk.bf16.gmra.mxu0 %vm72_vm0, %v51_v33 }
  0x86   :  { %v106_v34 = vpop.f32.mrf.mxu0 }
  0x87   :  { %v107_v36 = vadd.f32 %v740_v35, %v106_v34 }
  0x89   :  { %v146_v39 = vmax.f32 %v107_v36, 0.0 }
  0x8e   :  { %v108_v37 = vpop.f32.mrf.mxu0 }
  0x8f   :  { %v109_v38 = vadd.f32 %v740_v35, %v108_v37  ;;  %v580_v37 = vld [vmem:[%s795_s4] ss:$0 sm:$0xff] }
  0x91   :  { %v147_v40 = vmax.f32 %v109_v38, 0.0 }
  0x93   :  { %v162_v41 = vpack.c.bf16 %v147_v40, %v146_v39 }
  0x95   :  { %246 = vmatmul.bf16.vlgmr.msra.gmra.mxu1 %v162_v41 }
  0x96   :  { %v111_v42 = vpop.f32.mrf.mxu0 }
  0x97   :  { %v112_v43 = vadd.f32 %v740_v35, %v111_v42 }
  0x99   :  { %v148_v46 = vmax.f32 %v112_v43, 0.0 }
  0x9e   :  { %v113_v44 = vpop.f32.mrf.mxu0 }
  0x9f   :  { %v114_v45 = vadd.f32 %v740_v35, %v113_v44 }
  0xa1   :  { %v149_v47 = vmax.f32 %v114_v45, 0.0 }
  0xa3   :  { %v163_v48 = vpack.c.bf16 %v149_v47, %v148_v46 }
  0xa5   :  { %251 = vmatmul.bf16.gmra.mxu1 %v163_v48 }
  0xa6   :  { %v116_v49 = vpop.f32.mrf.mxu0 }
  0xa7   :  { %v117_v50 = vadd.f32 %v740_v35, %v116_v49 }
  0xa9   :  { %v150_v53 = vmax.f32 %v117_v50, 0.0 }
  0xae   :  { %v118_v51 = vpop.f32.mrf.mxu0 }
  0xaf   :  { %v119_v52 = vadd.f32 %v740_v35, %v118_v51 }
  0xb1   :  { %v151_v54 = vmax.f32 %v119_v52, 0.0 }
  0xb3   :  { %v164_v55 = vpack.c.bf16 %v151_v54, %v150_v53 }
  0xb5   :  { %256 = vmatmul.bf16.gmra.mxu1 %v164_v55 }
  0xb6   :  { %v121_v56 = vpop.f32.mrf.mxu0 }
  0xb7   :  { %v122_v57 = vadd.f32 %v740_v35, %v121_v56 }
  0xb9   :  { %v152_v60 = vmax.f32 %v122_v57, 0.0 }
  0xbe   :  { %v123_v58 = vpop.f32.mrf.mxu0 }
  0xbf   :  { %v124_v59 = vadd.f32 %v740_v35, %v123_v58 }
  0xc1   :  { %v153_v61 = vmax.f32 %v124_v59, 0.0 }
  0xc3   :  { %v165_v62 = vpack.c.bf16 %v153_v61, %v152_v60 }
  0xc5   :  { %261 = vmatmul.bf16.gmra.mxu1 %v165_v62 }
  0xc6   :  { %v126_v63 = vpop.f32.mrf.mxu0 }
  0xc7   :  { %v127_v0 = vadd.f32 %v740_v35, %v126_v63 }
  0xc9   :  { %v154_v3 = vmax.f32 %v127_v0, 0.0 }
  0xce   :  { %v128_v1 = vpop.f32.mrf.mxu0 }
  0xcf   :  { %v129_v2 = vadd.f32 %v740_v35, %v128_v1 }
  0xd1   :  { %v155_v4 = vmax.f32 %v129_v2, 0.0 }
  0xd3   :  { %v166_v5 = vpack.c.bf16 %v155_v4, %v154_v3 }
  0xd5   :  { %266 = vmatmul.bf16.gmra.mxu1 %v166_v5 }
  0xd6   :  { %v131_v6 = vpop.f32.mrf.mxu0 }
  0xd7   :  { %v132_v7 = vadd.f32 %v740_v35, %v131_v6 }
  0xd9   :  { %v156_v11 = vmax.f32 %v132_v7, 0.0 }
  0xde   :  { %v133_v8 = vpop.f32.mrf.mxu0 }
  0xdf   :  { %v134_v9 = vadd.f32 %v740_v35, %v133_v8 }
  0xe1   :  { %v157_v12 = vmax.f32 %v134_v9, 0.0 }
  0xe3   :  { %v167_v13 = vpack.c.bf16 %v157_v12, %v156_v11 }
  0xe5   :  { %271 = vmatmul.bf16.gmra.mxu1 %v167_v13 }
  0xe6   :  { %v136_v15 = vpop.f32.mrf.mxu0 }
  0xe7   :  { %v137_v18 = vadd.f32 %v740_v35, %v136_v15 }
  0xe9   :  { %v158_v22 = vmax.f32 %v137_v18, 0.0 }
  0xee   :  { %v138_v19 = vpop.f32.mrf.mxu0 }
  0xef   :  { %v139_v20 = vadd.f32 %v740_v35, %v138_v19 }
  0xf1   :  { %v159_v23 = vmax.f32 %v139_v20, 0.0 }
  0xf3   :  { %v168_v24 = vpack.c.bf16 %v159_v23, %v158_v22 }
  0xf5   :  { %276 = vmatmul.bf16.vlgmr.msra.gmra.mxu3 %v168_v24 }
  0xf6   :  { %v141_v26 = vpop.f32.mrf.mxu0 }
  0xf7   :  { %v142_v29 = vadd.f32 %v740_v35, %v141_v26 }
  0xf9   :  { %v160_v32 = vmax.f32 %v142_v29, 0.0 }
  0xfe   :  { %v143_v30 = vpop.f32.mrf.mxu0 }
  0xff   :  { %v144_v31 = vadd.f32 %v740_v35, %v143_v30 }
 0x101   :  { %v161_v33 = vmax.f32 %v144_v31, 0.0 }
 0x103   :  { %v169_v34 = vpack.c.bf16 %v161_v33, %v160_v32 }
 0x105   :  { %281 = vmatmul.bf16.gmra.mxu3 %v169_v34 }
 0x112   :  { %v247_v36 = vpop.f32.mrf.mxu1 }
 0x113   :  { %v248_v38 = vadd.f32 %v580_v37, %v247_v36 }
 0x115   :  { %v287_v41 = vmax.f32 %v248_v38, 0.0 }
 0x11a   :  { %v249_v39 = vpop.f32.mrf.mxu1 }
 0x11b   :  { %v250_v40 = vadd.f32 %v580_v37, %v249_v39 }
 0x11d   :  { %v288_v42 = vmax.f32 %v250_v40, 0.0 }
 0x11f   :  { %v303_v43 = vpack.c.bf16 %v288_v42, %v287_v41 }
 0x121   :  { %387 = vmatmul.bf16.vlgmr.msra.gmra.mxu2 %v303_v43 }
 0x122   :  { %v252_v44 = vpop.f32.mrf.mxu1 }
 0x123   :  { %v253_v45 = vadd.f32 %v580_v37, %v252_v44 }
 0x125   :  { %v289_v47 = vmax.f32 %v253_v45, 0.0 }
 0x12a   :  { %v254_v46 = vpop.f32.mrf.mxu1 }
 0x12b   :  { %v255_v35 = vadd.f32 %v580_v37, %v254_v46 }
 0x12d   :  { %v290_v48 = vmax.f32 %v255_v35, 0.0 }
 0x12f   :  { %v304_v49 = vpack.c.bf16 %v290_v48, %v289_v47 }
 0x131   :  { %392 = vmatmul.bf16.gmra.mxu2 %v304_v49 }
 0x132   :  { %v257_v50 = vpop.f32.mrf.mxu1 }
 0x133   :  { %v258_v51 = vadd.f32 %v580_v37, %v257_v50 }
 0x135   :  { %v291_v54 = vmax.f32 %v258_v51, 0.0 }
 0x13a   :  { %v259_v52 = vpop.f32.mrf.mxu1 }
 0x13b   :  { %v260_v53 = vadd.f32 %v580_v37, %v259_v52 }
 0x13d   :  { %v292_v55 = vmax.f32 %v260_v53, 0.0 }
 0x13f   :  { %v305_v56 = vpack.c.bf16 %v292_v55, %v291_v54 }
 0x141   :  { %397 = vmatmul.bf16.gmra.mxu2 %v305_v56 }
 0x142   :  { %v262_v57 = vpop.f32.mrf.mxu1 }
 0x143   :  { %v263_v58 = vadd.f32 %v580_v37, %v262_v57 }
 0x145   :  { %v293_v61 = vmax.f32 %v263_v58, 0.0 }
 0x14a   :  { %v264_v59 = vpop.f32.mrf.mxu1 }
 0x14b   :  { %v265_v60 = vadd.f32 %v580_v37, %v264_v59 }
 0x14d   :  { %v294_v62 = vmax.f32 %v265_v60, 0.0 }
 0x14f   :  { %v306_v63 = vpack.c.bf16 %v294_v62, %v293_v61 }
 0x151   :  { %402 = vmatmul.bf16.gmra.mxu2 %v306_v63 }
 0x152   :  { %v267_v0 = vpop.f32.mrf.mxu1 }
 0x153   :  { %v268_v1 = vadd.f32 %v580_v37, %v267_v0 }
 0x155   :  { %v295_v4 = vmax.f32 %v268_v1, 0.0 }
 0x15a   :  { %v269_v2 = vpop.f32.mrf.mxu1 }
 0x15b   :  { %v270_v3 = vadd.f32 %v580_v37, %v269_v2 }
 0x15d   :  { %v296_v5 = vmax.f32 %v270_v3, 0.0 }
 0x15f   :  { %v307_v6 = vpack.c.bf16 %v296_v5, %v295_v4 }
 0x161   :  { %407 = vmatmul.bf16.gmra.mxu2 %v307_v6 }
 0x162   :  { %v272_v7 = vpop.f32.mrf.mxu1 }
 0x163   :  { %v273_v8 = vadd.f32 %v580_v37, %v272_v7 }
 0x165   :  { %v297_v11 = vmax.f32 %v273_v8, 0.0 }
 0x16a   :  { %v274_v9 = vpop.f32.mrf.mxu1 }
 0x16b   :  { %v275_v10 = vadd.f32 %v580_v37, %v274_v9 }
 0x16d   :  { %v298_v12 = vmax.f32 %v275_v10, 0.0 }
 0x16f   :  { %v308_v13 = vpack.c.bf16 %v298_v12, %v297_v11 }
 0x171   :  { %412 = vmatmul.bf16.gmra.mxu2 %v308_v13 }
 0x178   :  { %v277_v14 = vpop.f32.mrf.mxu3 }
 0x179   :  { %v278_v15 = vadd.f32 %v580_v37, %v277_v14 }
 0x17b   :  { %v299_v18 = vmax.f32 %v278_v15, 0.0 }
 0x180   :  { %v279_v16 = vpop.f32.mrf.mxu3 }
 0x181   :  { %v280_v17 = vadd.f32 %v580_v37, %v279_v16 }
 0x183   :  { %v300_v19 = vmax.f32 %v280_v17, 0.0 }
 0x185   :  { %v309_v20 = vpack.c.bf16 %v300_v19, %v299_v18 }
 0x187   :  { %417 = vmatmul.bf16.vlgmr.msrb.gmra.mxu3 %v309_v20 }
 0x188   :  { %v282_v21 = vpop.f32.mrf.mxu3 }
 0x189   :  { %v283_v22 = vadd.f32 %v580_v37, %v282_v21 }
 0x18b   :  { %v301_v25 = vmax.f32 %v283_v22, 0.0 }
 0x190   :  { %v284_v23 = vpop.f32.mrf.mxu3 }
 0x191   :  { %v285_v24 = vadd.f32 %v580_v37, %v284_v23 }
 0x193   :  { %v302_v26 = vmax.f32 %v285_v24, 0.0 }
 0x195   :  { %v310_v27 = vpack.c.bf16 %v302_v26, %v301_v25 }
 0x197   :  { %422 = vmatmul.bf16.gmra.mxu3 %v310_v27 }
 0x1a4   :  { %v388_v29 = vpop.f32.mrf.mxu2 }
 0x1a5   :  { %v389_v30 = vadd.f32 %v581_v28, %v388_v29 }
 0x1a7   :  { %428 = vst [vmem:[#allocation2] sm:$0xff] %v389_v30 }
 0x1ac   :  { %v390_v31 = vpop.f32.mrf.mxu2 }
 0x1ad   :  { %v391_v32 = vadd.f32 %v581_v28, %v390_v31 }
 0x1af   :  { %429 = vst [vmem:[#allocation2 + $0x8] sm:$0xff] %v391_v32 }
 0x1b4   :  { %v393_v33 = vpop.f32.mrf.mxu2 }
 0x1b5   :  { %v394_v34 = vadd.f32 %v581_v28, %v393_v33 }
 0x1b7   :  { %430 = vst [vmem:[#allocation2 + $0x10] sm:$0xff] %v394_v34 }
 0x1bc   :  { %v395_v36 = vpop.f32.mrf.mxu2 }
 0x1bd   :  { %v396_v38 = vadd.f32 %v581_v28, %v395_v36 }
 0x1bf   :  { %431 = vst [vmem:[#allocation2 + $0x18] sm:$0xff] %v396_v38 }
 0x1c4   :  { %v398_v37 = vpop.f32.mrf.mxu2 }
 0x1c5   :  { %v399_v39 = vadd.f32 %v581_v28, %v398_v37 }
 0x1c7   :  { %432 = vst [vmem:[#allocation2 + $0x20] sm:$0xff] %v399_v39 }
 0x1cc   :  { %v400_v40 = vpop.f32.mrf.mxu2 }
 0x1cd   :  { %v401_v41 = vadd.f32 %v581_v28, %v400_v40 }
 0x1cf   :  { %433 = vst [vmem:[#allocation2 + $0x28] sm:$0xff] %v401_v41 }
 0x1d4   :  { %v403_v42 = vpop.f32.mrf.mxu2 }
 0x1d5   :  { %v404_v43 = vadd.f32 %v581_v28, %v403_v42 }
 0x1d7   :  { %434 = vst [vmem:[#allocation2 + $0x30] sm:$0xff] %v404_v43 }
 0x1dc   :  { %v405_v44 = vpop.f32.mrf.mxu2 }
 0x1dd   :  { %v406_v45 = vadd.f32 %v581_v28, %v405_v44 }
 0x1df   :  { %435 = vst [vmem:[#allocation2 + $0x38] sm:$0xff] %v406_v45 }
 0x1e4   :  { %v408_v46 = vpop.f32.mrf.mxu2 }
 0x1e5   :  { %v409_v35 = vadd.f32 %v581_v28, %v408_v46 }
 0x1e7   :  { %436 = vst [vmem:[#allocation2 + $0x40] sm:$0xff] %v409_v35 }
 0x1ec   :  { %v410_v47 = vpop.f32.mrf.mxu2 }
 0x1ed   :  { %v411_v48 = vadd.f32 %v581_v28, %v410_v47 }
 0x1ef   :  { %437 = vst [vmem:[#allocation2 + $0x48] sm:$0xff] %v411_v48 }
 0x1f4   :  { %v413_v49 = vpop.f32.mrf.mxu2 }
 0x1f5   :  { %v414_v50 = vadd.f32 %v581_v28, %v413_v49 }
 0x1f7   :  { %438 = vst [vmem:[#allocation2 + $0x50] sm:$0xff] %v414_v50 }
 0x1fc   :  { %v415_v51 = vpop.f32.mrf.mxu2 }
 0x1fd   :  { %v416_v52 = vadd.f32 %v581_v28, %v415_v51 }
 0x1ff   :  { %439 = vst [vmem:[#allocation2 + $0x58] sm:$0xff] %v416_v52 }
 0x20a   :  { %v418_v53 = vpop.f32.mrf.mxu3 }
 0x20b   :  { %v419_v54 = vadd.f32 %v581_v28, %v418_v53 }
 0x20d   :  { %440 = vst [vmem:[#allocation2 + $0x60] sm:$0xff] %v419_v54 }
 0x212   :  { %v420_v55 = vpop.f32.mrf.mxu3 }
 0x213   :  { %v421_v56 = vadd.f32 %v581_v28, %v420_v55 }
 0x215   :  { %441 = vst [vmem:[#allocation2 + $0x68] sm:$0xff] %v421_v56 }
 0x21a   :  { %v423_v57 = vpop.f32.mrf.mxu3 }
 0x21b   :  { %v424_v58 = vadd.f32 %v581_v28, %v423_v57 }
 0x21d   :  { %442 = vst [vmem:[#allocation2 + $0x70] sm:$0xff] %v424_v58 }
 0x222   :  { %v425_v59 = vpop.f32.mrf.mxu3 }
 0x223   :  { %v426_v60 = vadd.f32 %v581_v28, %v425_v59 }
 0x225   :  { %443 = vst [vmem:[#allocation2 + $0x78] sm:$0xff] %v426_v60 }
 0x226   :  { %456 = dma.vmem_to_hbm [thread:$0]  %s449_s21, 2048, %s451_s24, [#allocation3], %s609_s25, %s609_s25, %s610_s26  }
 0x227   :  { %606 = dma.done.wait [#allocation3], 2048  }
 0x228   :  { %607 = vsyncadd [#allocation3], 4294965248 }
 0x229   :  { %461 = vsyncpa [#allocation3], 1 }

</bundles_post_ra>
